<compile_context>
chip_gen: v7x
topology: tpu7x:2x2x1
jax: 0.10.0
libtpu: 0.0.40
codegen_flags: <defaults>
</compile_context>

<pallas_src>
import jax
import jax.numpy as jnp
from jax.experimental import pallas as pl
from jax.experimental.pallas import tpu as pltpu

IN_FEATURES = 48 * 4 * 4   # 768
HIDDEN = 100
HIDDEN_PAD = 128           # lane-dense padded hidden width
BN_EPS = 1e-5


def _domain_classifier_kernel(x_ref, w1_ref, gamma_ref, beta_ref, w2_ref,
                              b2_ref, o_ref):
    # linear1 (bias folded away by BN): (B,768)bf16 @ (768,128)bf16 -> (B,128) f32
    x_bf = x_ref[...].astype(jnp.bfloat16)
    h = jnp.dot(x_bf, w1_ref[...], preferred_element_type=jnp.float32)

    # BatchNorm1d (training mode: batch stats, biased variance) folded into
    # a single scale/shift.  Stats math stays on tiny (1,128) vregs.
    mean = jnp.mean(h, axis=0, keepdims=True)                   # (1,128)
    mean_sq = jnp.mean(h * h, axis=0, keepdims=True)            # (1,128)
    var = jnp.maximum(mean_sq - mean * mean, 0.0)
    scale = jax.lax.rsqrt(var + BN_EPS) * gamma_ref[...]        # (1,128)
    shift = beta_ref[...] - mean * scale                        # (1,128)

    # BN + ReLU in two wide VPU ops.
    h = jnp.maximum(h * scale + shift, 0.0)

    # linear2 (hidden -> 1) as a lane reduction (XLU), b2 scalar from SMEM.
    out = jnp.sum(h * w2_ref[...], axis=-1, keepdims=True) + b2_ref[0]

    o_ref[...] = jax.nn.sigmoid(out)


def prepare_params(params):
    """One-time conversion of PyTorch-layout params into kernel-ready form."""
    pad = HIDDEN_PAD - HIDDEN
    # b1 is intentionally dropped: train-mode BN's mean subtraction cancels it.
    return {
        "w1": jnp.pad(params["w1"], ((0, 0), (0, pad))).astype(jnp.bfloat16),
        "gamma": jnp.pad(params["gamma"], ((0, 0), (0, pad))),   # zero pad lanes
        "beta": jnp.pad(params["beta"], ((0, 0), (0, pad))),
        "w2_row": jnp.pad(params["w2"].reshape(1, HIDDEN), ((0, 0), (0, pad))),
        "b2": params["b2"].reshape((1,)).astype(jnp.float32),
    }


def domain_classifier_forward(x, alpha, kparams):
    """x: (B, 768) float32.  alpha: unused in forward (gradient-reversal scale)."""
    del alpha  # ReverseLayerF is the identity in the forward pass.
    B = x.shape[0]

    vmem = pl.BlockSpec(memory_space=pltpu.MemorySpace.VMEM)
    smem = pl.BlockSpec(memory_space=pltpu.MemorySpace.SMEM)

    return pl.pallas_call(
        _domain_classifier_kernel,
        out_shape=jax.ShapeDtypeStruct((B, 1), jnp.float32),
        in_specs=[vmem, vmem, vmem, vmem, vmem, smem],
        out_specs=vmem,
    )(x, kparams["w1"], kparams["gamma"], kparams["beta"],
      kparams["w2_row"], kparams["b2"])


def init_params(key):
    k1, k2, k3, k4 = jax.random.split(key, 4)
    # PyTorch Linear default init: U(-1/sqrt(fan_in), 1/sqrt(fan_in))
    lim1 = 1.0 / jnp.sqrt(jnp.float32(IN_FEATURES))
    lim2 = 1.0 / jnp.sqrt(jnp.float32(HIDDEN))
    return {
        "w1": jax.random.uniform(k1, (IN_FEATURES, HIDDEN), jnp.float32, -lim1, lim1),
        "b1": jax.random.uniform(k2, (1, HIDDEN), jnp.float32, -lim1, lim1),
        "gamma": jnp.ones((1, HIDDEN), jnp.float32),   # BatchNorm1d weight
        "beta": jnp.zeros((1, HIDDEN), jnp.float32),   # BatchNorm1d bias
        "w2": jax.random.uniform(k3, (HIDDEN, 1), jnp.float32, -lim2, lim2),
        "b2": jax.random.uniform(k4, (1, 1), jnp.float32, -lim2, lim2),
    }


def _reference_forward(x, params):
    """Pure-JAX f32 reference faithful to the PyTorch module (b1 included)."""
    h = x @ params["w1"] + params["b1"]
    mean = jnp.mean(h, axis=0, keepdims=True)
    var = jnp.mean((h - mean) ** 2, axis=0, keepdims=True)      # biased variance
    h = (h - mean) * jax.lax.rsqrt(var + BN_EPS) * params["gamma"] + params["beta"]
    h = jnp.maximum(h, 0.0)
    return jax.nn.sigmoid(h @ params["w2"] + params["b2"])


if __name__ == "__main__":
    key = jax.random.PRNGKey(0)
    pkey, xkey = jax.random.split(key)
    params = init_params(pkey)
    kparams = prepare_params(params)

    B = 8
    x = jax.random.normal(xkey, (B, IN_FEATURES), jnp.float32)
    alpha = 0.5  # only used by the backward pass of ReverseLayerF

    y = domain_classifier_forward(x, alpha, kparams)
    jax.block_until_ready(y)
    assert y.shape == (B, 1) and y.dtype == jnp.float32

    # Correctness vs. f32 reference (bf16 matmul => small tolerance).
    y_ref = _reference_forward(x, params)
    assert jnp.max(jnp.abs(y - y_ref)) < 3e-2

    print("KERNEL_OK")
</pallas_src>

<mosaic_0001>
module attributes {stable_mosaic.version = 11 : i64} {
  func.func @_domain_classifier_kernel(%arg0: memref<8x768xf32, #tpu.memory_space<vmem>>, %arg1: memref<768x128xbf16, #tpu.memory_space<vmem>>, %arg2: memref<1x128xf32, #tpu.memory_space<vmem>>, %arg3: memref<1x128xf32, #tpu.memory_space<vmem>>, %arg4: memref<1x128xf32, #tpu.memory_space<vmem>>, %arg5: memref<1xf32, #tpu.memory_space<smem>>, %arg6: memref<8x1xf32, #tpu.memory_space<vmem>>) attributes {dimension_semantics = [], scalar_prefetch = 0 : i64, scratch_operands = 0 : i64, tpu.core_type = #tpu.core_type<tc>} {
    %c0 = arith.constant 0 : index
    %c0_0 = arith.constant 0 : index
    %0 = vector.load %arg0[%c0, %c0_0] : memref<8x768xf32, #tpu.memory_space<vmem>>, vector<8x768xf32>
    %1 = arith.truncf %0 : vector<8x768xf32> to vector<8x768xbf16>
    %c0_1 = arith.constant 0 : index
    %c0_2 = arith.constant 0 : index
    %2 = vector.load %arg1[%c0_1, %c0_2] : memref<768x128xbf16, #tpu.memory_space<vmem>>, vector<768x128xbf16>
    %cst = arith.constant dense<0.000000e+00> : vector<8x128xf32>
    %3 = tpu.matmul %1, %2, %cst {dimension_numbers = #tpu.dot_dimension_numbers<[1], [0], [0], [1], [0, 0, 1, 1], [], []>} : vector<8x768xbf16>, vector<768x128xbf16>, vector<8x128xf32> -> vector<8x128xf32>
    %cst_3 = arith.constant dense<0.000000e+00> : vector<128xf32>
    %4 = vector.multi_reduction <add>, %3, %cst_3 [0] : vector<8x128xf32> to vector<128xf32>
    %5 = vector.shape_cast %4 : vector<128xf32> to vector<1x128xf32>
    %cst_4 = arith.constant 8.000000e+00 : f32
    %6 = vector.broadcast %cst_4 : f32 to vector<1x128xf32>
    %7 = arith.divf %5, %6 : vector<1x128xf32>
    %8 = arith.mulf %3, %3 : vector<8x128xf32>
    %cst_5 = arith.constant dense<0.000000e+00> : vector<128xf32>
    %9 = vector.multi_reduction <add>, %8, %cst_5 [0] : vector<8x128xf32> to vector<128xf32>
    %10 = vector.shape_cast %9 : vector<128xf32> to vector<1x128xf32>
    %cst_6 = arith.constant 8.000000e+00 : f32
    %11 = vector.broadcast %cst_6 : f32 to vector<1x128xf32>
    %12 = arith.divf %10, %11 : vector<1x128xf32>
    %13 = arith.mulf %7, %7 : vector<1x128xf32>
    %14 = arith.subf %12, %13 : vector<1x128xf32>
    %cst_7 = arith.constant 0.000000e+00 : f32
    %15 = vector.broadcast %cst_7 : f32 to vector<1x128xf32>
    %16 = arith.maximumf %14, %15 : vector<1x128xf32>
    %cst_8 = arith.constant 9.99999974E-6 : f32
    %17 = vector.broadcast %cst_8 : f32 to vector<1x128xf32>
    %18 = arith.addf %16, %17 : vector<1x128xf32>
    %19 = math.rsqrt %18 : vector<1x128xf32>
    %c0_9 = arith.constant 0 : index
    %c0_10 = arith.constant 0 : index
    %20 = vector.load %arg2[%c0_9, %c0_10] : memref<1x128xf32, #tpu.memory_space<vmem>>, vector<1x128xf32>
    %21 = arith.mulf %19, %20 : vector<1x128xf32>
    %c0_11 = arith.constant 0 : index
    %c0_12 = arith.constant 0 : index
    %22 = vector.load %arg3[%c0_11, %c0_12] : memref<1x128xf32, #tpu.memory_space<vmem>>, vector<1x128xf32>
    %23 = arith.mulf %7, %21 : vector<1x128xf32>
    %24 = arith.subf %22, %23 : vector<1x128xf32>
    %25 = vector.broadcast %21 : vector<1x128xf32> to vector<8x128xf32>
    %26 = arith.mulf %3, %25 : vector<8x128xf32>
    %27 = vector.broadcast %24 : vector<1x128xf32> to vector<8x128xf32>
    %28 = arith.addf %26, %27 : vector<8x128xf32>
    %cst_13 = arith.constant 0.000000e+00 : f32
    %29 = vector.broadcast %cst_13 : f32 to vector<8x128xf32>
    %30 = arith.maximumf %28, %29 : vector<8x128xf32>
    %c0_14 = arith.constant 0 : index
    %c0_15 = arith.constant 0 : index
    %31 = vector.load %arg4[%c0_14, %c0_15] : memref<1x128xf32, #tpu.memory_space<vmem>>, vector<1x128xf32>
    %32 = vector.broadcast %31 : vector<1x128xf32> to vector<8x128xf32>
    %33 = arith.mulf %30, %32 : vector<8x128xf32>
    %cst_16 = arith.constant dense<0.000000e+00> : vector<8xf32>
    %34 = vector.multi_reduction <add>, %33, %cst_16 [1] : vector<8x128xf32> to vector<8xf32>
    %35 = vector.shape_cast %34 : vector<8xf32> to vector<8x1xf32>
    %c0_17 = arith.constant 0 : index
    %36 = memref.load %arg5[%c0_17] : memref<1xf32, #tpu.memory_space<smem>>
    %37 = vector.broadcast %36 : f32 to vector<8x1xf32>
    %38 = arith.addf %35, %37 : vector<8x1xf32>
    %39 = arith.negf %38 : vector<8x1xf32>
    %40 = math.exp %39 : vector<8x1xf32>
    %cst_18 = arith.constant 1.000000e+00 : f32
    %41 = vector.broadcast %cst_18 : f32 to vector<8x1xf32>
    %42 = arith.addf %41, %40 : vector<8x1xf32>
    %43 = arith.divf %41, %42 : vector<8x1xf32>
    %c0_19 = arith.constant 0 : index
    %c0_20 = arith.constant 0 : index
    %44 = vector.load %arg6[%c0_19, %c0_20] : memref<8x1xf32, #tpu.memory_space<vmem>>, vector<8x1xf32>
    tpu.vector_store %arg6[%c0_19, %c0_20], %43 {strides = array<i32>} : memref<8x1xf32, #tpu.memory_space<vmem>>, vector<8x1xf32>,
    return
  }
}

</mosaic_0001>

<bundles_post_ra>
// kernel: tpu_custom_call.1
= control target key start
LH: loop header
LB: loop body
LE: loop exit
PB: predicated region body
PF: predicated region fallthrough
CT: control target
= control target key end

     0   :  { %12 = vsyncpa [#allocation4], 0  ;;  %s940_s0 = inlined_call_operand.hbm [shape: f32[8,768], index: 0, kind: input, shape index: {}]   ;;  %s941_s1 = inlined_call_operand.hbm [shape: bf16[768,128], index: 1, kind: input, shape index: {}]   ;;  %s942_s2 = inlined_call_operand.vmem [shape: f32[1,128], index: 2, kind: input, shape index: {}]   ;;  %s943_s3 = inlined_call_operand.vmem [shape: f32[1,128], index: 3, kind: input, shape index: {}]   ;;  %s944_s4 = inlined_call_operand.vmem [shape: f32[1,128], index: 4, kind: input, shape index: {}]   ;;  %s945_s5 = inlined_call_operand.<no memory space> [shape: f32[1], index: 5, kind: input, shape index: {}]   ;;  %s946_s6 = inlined_call_operand.vmem [shape: f32[8,1], index: 6, kind: output, shape index: {}]  }
   0x1   :  { %13 = vsyncpa [#allocation6], 0  ;;  %s855_s21 = smov [#allocation3]   ;;  %s856_s23 = smov [#allocation5]  }
   0x2   :  { %s20_s22 = sshll.u32 %s855_s21, 4  ;;  %s29_s24 = sshll.u32 %s856_s23, 4  ;;  %s21_s22 = int_to_ptr.vmem [resolvable:$true] %s20_s22  ;;  %s894_s24 = int_to_ptr.vmem [resolvable:$true] %s29_s24 }
   0x3   :  { %s807_s27 = scalar_lea.hbm %s940_s0, 768 }
   0x4   :  { %p808_p0 = scmp.ne.s32.totalorder %s940_s0, %s807_s27  ;;  %p811_p1 = scmp.lt.u32.totalorder %s807_s27, %s940_s0 }
   0x6   :  { %p813_p2 = pnand %p811_p1, %p808_p0 }
   0x8   :  { %816 = shalt.err (!%p813_p2)
}
   0x9   :  { %s817_s8 = scalar_lea.vmem %s21_s22, 768  ;;  %p822_p4 = scmp.lt.s32.totalorder %s21_s22, %s21_s22 }
   0xa   :  { %p818_p3 = scmp.ne.s32.totalorder %s21_s22, %s817_s8  ;;  %p823_p5 = scmp.lt.s32.totalorder %s817_s8, %s817_s8 }
   0xc   :  { %p824_p6 = por %p823_p5, %p822_p4 }
   0xe   :  { %p825_p7 = pnand %p824_p6, %p818_p3 }
  0x10   :  { %828 = shalt.err (!%p825_p7)
}
  0x11   :  { %23 = dma.hbm_to_vmem [thread:$0]  %s940_s0, 768, %s21_s22, [#allocation4]  }
  0x12   :  { %s829_s13 = scalar_lea.hbm %s941_s1, 6144 }
  0x13   :  { %p830_p8 = scmp.ne.s32.totalorder %s941_s1, %s829_s13  ;;  %p833_p9 = scmp.lt.u32.totalorder %s829_s13, %s941_s1 }
  0x15   :  { %p835_p10 = pnand %p833_p9, %p830_p8 }
  0x17   :  { %838 = shalt.err (!%p835_p10)
}
  0x18   :  { %s839_s18 = scalar_lea.vmem %s894_s24, 6144  ;;  %p844_p12 = scmp.lt.s32.totalorder %s894_s24, %s894_s24 }
  0x19   :  { %p840_p11 = scmp.ne.s32.totalorder %s894_s24, %s839_s18  ;;  %p845_p13 = scmp.lt.s32.totalorder %s839_s18, %s839_s18 }
  0x1b   :  { %p846_p0 = por %p845_p13, %p844_p12 }
  0x1d   :  { %p847_p1 = pnand %p846_p0, %p840_p11 }
  0x1f   :  { %850 = shalt.err (!%p847_p1)
}
  0x20   :  { %s857_s0 = smov 64   ;;  %s858_s19 = smov 4  }
  0x21   :  { %35 = dma.hbm_to_vmem [thread:$0]  %s941_s1, 6144, %s894_s24, [#allocation6], %s857_s0, %s857_s0, %s858_s19  }
  0x22   :  { %851 = dma.done.wait [#allocation4], 768  }
  0x23   :  { %852 = vsyncadd [#allocation4], 4294966528 }
  0x24   :  { %853 = dma.done.wait [#allocation6], 6144  }
  0x25   :  { %854 = vsyncadd [#allocation6], 4294961152  ;;  %v753_v0 = vld [vmem:[#allocation5 + $0x40] sm:$0xff]   ;;  %v757_v4 = vld [vmem:[#allocation5 + $0x48] sm:$0xff]   ;;  %vm625_vm0 = vcmask 7168  }
  0x26   :  { %v754_v1 = vld [vmem:[#allocation5 + $0xc0] sm:$0xff]   ;;  %683 = vmatprep.subr.bf16.mxu0 %v753_v0  ;;  %v758_v5 = vld [vmem:[#allocation5 + $0xc8] sm:$0xff]   ;;  %v761_v8 = vld [vmem:[#allocation5 + $0x50] sm:$0xff]  }
  0x27   :  { %v755_v2 = vld [vmem:[#allocation5] sm:$0xff]   ;;  %705 = vmatprep.subr.bf16.mxu1 %v754_v1  ;;  %v759_v6 = vld [vmem:[#allocation5 + $0x8] sm:$0xff]   ;;  %v762_v9 = vld [vmem:[#allocation5 + $0xd0] sm:$0xff]  }
  0x28   :  { %v756_v3 = vld [vmem:[#allocation5 + $0x80] sm:$0xff]   ;;  %684 = vmatpush3.bf16.msra.mxu0 %v755_v2  ;;  %v760_v7 = vld [vmem:[#allocation5 + $0x88] sm:$0xff]   ;;  %v763_v10 = vld [vmem:[#allocation5 + $0x10] sm:$0xff]  }
  0x29   :  { %706 = vmatpush3.bf16.msra.mxu1 %v756_v3  ;;  %685 = vmatprep.subr.bf16.mxu0 %v757_v4  ;;  %v764_v11 = vld [vmem:[#allocation5 + $0x90] sm:$0xff]   ;;  %v765_v12 = vld [vmem:[#allocation5 + $0x58] sm:$0xff]   ;;  %v769_v16 = vld [vmem:[#allocation5 + $0x60] sm:$0xff]  }
  0x2a   :  { %707 = vmatprep.subr.bf16.mxu1 %v758_v5  ;;  %v766_v13 = vld [vmem:[#allocation5 + $0xd8] sm:$0xff]   ;;  %v770_v17 = vld [vmem:[#allocation5 + $0xe0] sm:$0xff]   ;;  %v773_v20 = vld [vmem:[#allocation5 + $0x68] sm:$0xff]  }
  0x2b   :  { %v767_v14 = vld [vmem:[#allocation5 + $0x18] sm:$0xff]   ;;  %v771_v18 = vld [vmem:[#allocation5 + $0x20] sm:$0xff]   ;;  %v774_v21 = vld [vmem:[#allocation5 + $0xe8] sm:$0xff]  }
  0x2c   :  { %686 = vmatpush3.bf16.msra.mxu0 %v759_v6  ;;  %v768_v15 = vld [vmem:[#allocation5 + $0x98] sm:$0xff]   ;;  %v772_v19 = vld [vmem:[#allocation5 + $0xa0] sm:$0xff]   ;;  %v775_v22 = vld [vmem:[#allocation5 + $0x28] sm:$0xff]  }
  0x2d   :  { %708 = vmatpush3.bf16.msra.mxu1 %v760_v7  ;;  %687 = vmatprep.subr.bf16.mxu0 %v761_v8  ;;  %v776_v23 = vld [vmem:[#allocation5 + $0xa8] sm:$0xff]   ;;  %v777_v24 = vld [vmem:[#allocation5 + $0x70] sm:$0xff]   ;;  %v781_v28 = vld [vmem:[#allocation5 + $0x78] sm:$0xff]  }
  0x2e   :  { %709 = vmatprep.subr.bf16.mxu1 %v762_v9  ;;  %v778_v25 = vld [vmem:[#allocation5 + $0xf0] sm:$0xff]   ;;  %v782_v29 = vld [vmem:[#allocation5 + $0xf8] sm:$0xff]   ;;  %v54_v33 = vld [vmem:[#allocation3 + $0x18] sm:$0xff] }
  0x2f   :  { %v779_v26 = vld [vmem:[#allocation5 + $0x30] sm:$0xff]   ;;  %v783_v30 = vld [vmem:[#allocation5 + $0x38] sm:$0xff]   ;;  %v60_v36 = vpack.c.bf16 %v54_v33, %v54_v33  ;;  %v53_v38 = vld [vmem:[#allocation3 + $0x10] sm:$0xff] }
  0x30   :  { %688 = vmatpush3.bf16.msra.mxu0 %v763_v10  ;;  %v780_v27 = vld [vmem:[#allocation5 + $0xb0] sm:$0xff]   ;;  %v784_v31 = vld [vmem:[#allocation5 + $0xb8] sm:$0xff]   ;;  %v59_v39 = vpack.c.bf16 %v53_v38, %v53_v38  ;;  %v785_v40 = vld [vmem:[#allocation5 + $0x140] sm:$0xff]  }
  0x31   :  { %710 = vmatpush3.bf16.msra.mxu1 %v764_v11  ;;  %689 = vmatprep.subr.bf16.mxu0 %v765_v12  ;;  %v52_v32 = vld [vmem:[#allocation3 + $0x8] sm:$0xff]  ;;  %v51_v34 = vld [vmem:[#allocation3] sm:$0xff]  ;;  %v786_v41 = vld [vmem:[#allocation5 + $0x100] sm:$0xff]  }
  0x32   :  { %711 = vmatprep.subr.bf16.mxu1 %v766_v13  ;;  %v58_v35 = vpack.c.bf16 %v52_v32, %v52_v32  ;;  %v57_v37 = vpack.c.bf16 %v51_v34, %v51_v34  ;;  %519 = vmatprep.mubr.bf16.mxu1 %v60_v36  ;;  %v787_v42 = vld [vmem:[#allocation5 + $0x148] sm:$0xff]   ;;  %v789_v44 = vld [vmem:[#allocation5 + $0x150] sm:$0xff]   ;;  %v791_v46 = vld [vmem:[#allocation5 + $0x158] sm:$0xff]   ;;  %v593_v32 = vlaneseq }
  0x33   :  { %v788_v43 = vld [vmem:[#allocation5 + $0x108] sm:$0xff]   ;;  %v790_v45 = vld [vmem:[#allocation5 + $0x110] sm:$0xff]   ;;  %v792_v47 = vld [vmem:[#allocation5 + $0x118] sm:$0xff]  }
  0x34   :  { %690 = vmatpush3.bf16.msra.mxu0 %v767_v14  ;;  %479 = vmatprep.mubr.bf16.mxu0 %v58_v35  ;;  %v793_v48 = vld [vmem:[#allocation5 + $0x160] sm:$0xff]   ;;  %v56_v49 = vld [vmem:[#allocation3 + $0x28] sm:$0xff]  ;;  %v795_v52 = vld [vmem:[#allocation5 + $0x168] sm:$0xff]   ;;  %v594_v33 = vshrl.u32 %v593_v32, 7 }
  0x35   :  { %712 = vmatpush3.bf16.msra.mxu1 %v768_v15  ;;  %691 = vmatprep.subr.bf16.mxu0 %v769_v16  ;;  %v794_v50 = vld [vmem:[#allocation5 + $0x120] sm:$0xff]   ;;  %v62_v51 = vpack.c.bf16 %v56_v49, %v56_v49  ;;  %v796_v53 = vld [vmem:[#allocation5 + $0x128] sm:$0xff]   ;;  %v797_v54 = vld [vmem:[#allocation5 + $0x170] sm:$0xff]  }
  0x36   :  { %713 = vmatprep.subr.bf16.mxu1 %v770_v17  ;;  %v798_v55 = vld [vmem:[#allocation5 + $0x130] sm:$0xff]   ;;  %v799_v56 = vld [vmem:[#allocation5 + $0x178] sm:$0xff]   ;;  %v595_v35 = vsub.s32 0, %v594_v33 }
  0x37   :  { %v800_v57 = vld [vmem:[#allocation5 + $0x138] sm:$0xff]   ;;  %v55_v58 = vld [vmem:[#allocation3 + $0x20] sm:$0xff] }
  0x38   :  { %692 = vmatpush3.bf16.msra.mxu0 %v771_v18  ;;  %v61_v59 = vpack.c.bf16 %v55_v58, %v55_v58  ;;  %v588_v34 = vld [vmem:[%s942_s2] sm:$0x1] }
  0x39   :  { %714 = vmatpush3.bf16.msra.mxu1 %v772_v19  ;;  %693 = vmatprep.subr.bf16.mxu0 %v773_v20  ;;  %v590_v38 = vld [vmem:[%s943_s3] sm:$0x1] }
  0x3a   :  { %715 = vmatprep.subr.bf16.mxu1 %v774_v21 }
  0x3c   :  { %694 = vmatpush3.bf16.msra.mxu0 %v775_v22 }
  0x3d   :  { %716 = vmatpush3.bf16.msra.mxu1 %v776_v23  ;;  %695 = vmatprep.subr.bf16.mxu0 %v777_v24 }
  0x3e   :  { %717 = vmatprep.subr.bf16.mxu1 %v778_v25 }
  0x40   :  { %696 = vmatpush3.bf16.msra.mxu0 %v779_v26 }
  0x41   :  { %718 = vmatpush3.bf16.msra.mxu1 %v780_v27  ;;  %697 = vmatprep.subr.bf16.mxu0 %v781_v28 }
  0x42   :  { %719 = vmatprep.subr.bf16.mxu1 %v782_v29 }
  0x44   :  { %698 = vmatpush3.bf16.msra.mxu0 %v783_v30 }
  0x45   :  { %720 = vmatpush3.bf16.msra.mxu1 %v784_v31  ;;  %727 = vmatprep.subr.bf16.mxu0 %v785_v40 }
  0x47   :  { %480 = vmatmul.mubr.bf16.vlgmr.msra.gmra.mrb[0].mxu0 %v57_v37 }
  0x48   :  { %520 = vmatmul.mubr.bf16.vlgmr.msra.gmra.mrb[0].mxu1 %v59_v39  ;;  %728 = vmatpush3.bf16.msra.mxu0 %v786_v41 }
  0x49   :  { %729 = vmatprep.subr.bf16.mxu0 %v787_v42  ;;  %559 = vmatprep.mubr.bf16.mxu0 %v62_v51 }
  0x4c   :  { %730 = vmatpush3.bf16.msra.mxu0 %v788_v43 }
  0x4d   :  { %731 = vmatprep.subr.bf16.mxu0 %v789_v44 }
  0x50   :  { %732 = vmatpush3.bf16.msra.mxu0 %v790_v45  ;;  %v681_v45 = vld [vmem:[%s944_s4] ss:$0 sm:$0xff] }
  0x51   :  { %733 = vmatprep.subr.bf16.mxu0 %v791_v46 }
  0x54   :  { %734 = vmatpush3.bf16.msra.mxu0 %v792_v47 }
  0x55   :  { %735 = vmatprep.subr.bf16.mxu0 %v793_v48  ;;  %v617_v48 = vstv %s945_s5 }
  0x58   :  { %736 = vmatpush3.bf16.msra.mxu0 %v794_v50 }
  0x59   :  { %737 = vmatprep.subr.bf16.mxu0 %v795_v52 }
  0x5c   :  { %738 = vmatpush3.bf16.msra.mxu0 %v796_v53 }
  0x5d   :  { %739 = vmatprep.subr.bf16.mxu0 %v797_v54 }
  0x60   :  { %740 = vmatpush3.bf16.msra.mxu0 %v798_v55 }
  0x61   :  { %741 = vmatprep.subr.bf16.mxu0 %v799_v56 }
  0x64   :  { %742 = vmatpush3.bf16.msra.mxu0 %v800_v57 }
  0x67   :  { %560 = vmatmul.mubr.bf16.vlgmr.msra.gmra.mrb[4].mxu0 %v61_v59 }
 0x11a   :  { %v699_v60 = vpop.f32.mrb[0].mxu0 }
 0x11b   :  { %v721_v61 = vpop.f32.mrb[0].mxu1  ;;  %v700_v62 = vpop.f32.mrb[1].mxu0 }
 0x11c   :  { %v722_v63 = vpop.f32.mrb[1].mxu1  ;;  %v701_v0 = vadd.f32 %v700_v62, %v699_v60  ;;  %v702_v2 = vpop.f32.mrb[2].mxu0 }
 0x11d   :  { %v723_v1 = vadd.f32 %v722_v63, %v721_v61  ;;  %v724_v3 = vpop.f32.mrb[2].mxu1  ;;  %v703_v4 = vpop.f32.mrb[3].mxu0 }
 0x11e   :  { %v725_v5 = vpop.f32.mrb[3].mxu1 }
 0x11f   :  { %v522_v6 = vadd.f32 %v723_v1, %v701_v0 }
 0x13a   :  { %v743_v7 = vpop.f32.mrb[4].mxu0 }
 0x13b   :  { %v744_v8 = vpop.f32.mrb[5].mxu0 }
 0x13c   :  { %v745_v9 = vadd.f32 %v744_v8, %v743_v7  ;;  %v746_v10 = vpop.f32.mrb[6].mxu0 }
 0x13d   :  { %v747_v11 = vpop.f32.mrb[7].mxu0 }
 0x13e   :  { %v562_v12 = vadd.f32 %v745_v9, %v522_v6 }
 0x140   :  { %v567_v13 = vrot.slane %v562_v12, 4  ;;  %v575_v14 = vmul.f32 %v562_v12, %v562_v12 }
 0x142   :  { %v568_v15 = vadd.f32 %v567_v13, %v562_v12  ;;  %v576_v16 = vrot.slane %v575_v14, 4 }
 0x144   :  { %v569_v17 = vrot.slane %v568_v15, 2  ;;  %v577_v18 = vadd.f32 %v576_v16, %v575_v14 }
 0x146   :  { %v570_v19 = vadd.f32 %v569_v17, %v568_v15  ;;  %v578_v20 = vrot.slane %v577_v18, 2 }
 0x148   :  { %v579_v21 = vadd.f32 %v578_v20, %v577_v18  ;;  %v571_v22 = vrot.slane %v570_v19, 1 }
 0x14a   :  { %v580_v23 = vrot.slane %v579_v21, 1  ;;  %v572_v24 = vadd.f32 %v571_v22, %v570_v19 }
 0x14c   :  { %v581_v25 = vadd.f32 %v580_v23, %v579_v21  ;;  %v574_v26 = vmul.f32 0.125, %v572_v24 }
 0x14e   :  { %v582_v27 = vmul.f32 0.125, %v581_v25  ;;  %v583_v28 = vmul.f32 %v574_v26, %v574_v26 }
 0x150   :  { %v584_v29 = vsub.f32 %v582_v27, %v583_v28 }
 0x152   :  { %v585_v30 = vmax.f32 %v584_v29, 0.0 }
 0x154   :  { %v586_v31 = vadd.f32 1e-05, %v585_v30 }
 0x156   :  { %801 = vrsqrt.f32 %v586_v31 }
 0x160   :  { %v802_v36 = vpop.eup %801 }
 0x161   :  { %v589_v37 = vmul.f32 %v802_v36, %v588_v34 }
 0x163   :  { %v591_v39 = vmul.f32 %v589_v37, %v574_v26  ;;  %v596_v40 = vrot.slane %v589_v37, %v595_v35 }
 0x165   :  { %v592_v41 = vsub.f32 %v590_v38, %v591_v39  ;;  %v597_v42 = vmul.f32 %v596_v40, %v562_v12 }
 0x167   :  { %v602_v43 = vrot.slane %v592_v41, %v595_v35 }
 0x169   :  { %v604_v44 = vadd.f32 %v602_v43, %v597_v42 }
 0x16b   :  { %v605_v46 = vmax.f32 %v604_v44, 0.0 }
 0x16d   :  { %v613_v47 = vmul.f32 %v681_v45, %v605_v46 }
 0x16f   :  { %614 = vadd.xlane.f32.xlu0 %v613_v47 }
 0x1fc   :  { %v615_v49 = vpop.xlane.xlu0 %614 }
 0x1fd   :  { %v618_v50 = vadd.f32 %v617_v48, %v615_v49 }
 0x1ff   :  { %v682_v51 = vmul.f32 -1.442695, %v618_v50 }
 0x201   :  { %803 = vpow2.f32 %v682_v51 }
 0x20b   :  { %v804_v52 = vpop.eup %803 }
 0x20c   :  { %v622_v53 = vadd.f32 1.0, %v804_v52 }
 0x20e   :  { %805 = vrcp.f32 %v622_v53 }
 0x218   :  { %v806_v54 = vpop.eup %805 }
 0x219   :  { %626 = vst.msk [vmem:[%s946_s6] sm:$0xff] %vm625_vm0, %v806_v54 }
 0x21a   :  { %631 = vsyncpa [#allocation4], 1 }
 0x21b   :  { %632 = vsyncpa [#allocation6], 1 }

</bundles_post_ra>
